<compile_context>
chip_gen: v7x
topology: tpu7x:2x2x1
jax: 0.10.0
libtpu: 0.0.40
codegen_flags: <defaults>
</compile_context>

<pallas_src>
import numpy as np

import jax
import jax.numpy as jnp
from jax.experimental import pallas as pl
from jax.experimental.pallas import tpu as pltpu


# ----------------------------------------------------------------------------
# Kernel: full decoder forward for one batch tile.
#   y_ref    : (TB, P)    f32   input state tile
#   w1..w4   : bf16 weights with gather/scatter folded in (hidden padded to H)
#   b1..b4   : f32 biases
#   cmask    : (1, nxny)  f32   1.0 at control columns, 0.0 elsewhere
#   o_ref    : (TB, nxny) f32 (or bf16) output state tile
# ----------------------------------------------------------------------------
def _decoder_kernel(y_ref, w1_ref, b1_ref, w2_ref, b2_ref,
                    w3_ref, b3_ref, w4_ref, b4_ref, cmask_ref, o_ref):
    y = y_ref[...].astype(jnp.float32)                 # (TB, P)

    # Layer 1: (folded gather) Linear + ReLU
    h = jnp.dot(y.astype(jnp.bfloat16), w1_ref[...],
                preferred_element_type=jnp.float32)
    h = jnp.maximum(h + b1_ref[...], 0.0)

    # Layer 2: Linear + ReLU
    h = jnp.dot(h.astype(jnp.bfloat16), w2_ref[...],
                preferred_element_type=jnp.float32)
    h = jnp.maximum(h + b2_ref[...], 0.0)

    # Layer 3: Linear + ReLU
    h = jnp.dot(h.astype(jnp.bfloat16), w3_ref[...],
                preferred_element_type=jnp.float32)
    h = jnp.maximum(h + b3_ref[...], 0.0)

    # Output layer: (folded scatter) Linear, no activation
    out = jnp.dot(h.astype(jnp.bfloat16), w4_ref[...],
                  preferred_element_type=jnp.float32)
    out = out + b4_ref[...]

    # Control-column passthrough (f32): x[:, ci] = y[:, ci]
    o_ref[...] = (out + y * cmask_ref[...]).astype(o_ref.dtype)


def _round_up(x, m):
    return ((x + m - 1) // m) * m


_MAX_TB = 1024  # large tiles amortize the ~0.35 us/step grid overhead


def _choose_tb(batch, max_tb=_MAX_TB):
    """Pick a batch tile.

    - a tile equal to the full (tiny) batch is legal (block == array dim)
    - otherwise sublane-aligned (multiple of 8), capped at `max_tb`
    - prefer >= 2 tiles so both v7x TensorCores get work on the parallel axis
    """
    if batch <= 8:
        return batch
    if batch <= 2 * max_tb:
        half = (batch + 1) // 2
        return min(max_tb, _round_up(half, 8))
    return max_tb


def _vmem_cap_bytes():
    # Generation-aware cap: ~75% of physical VMEM (64 MiB on v7x, 128 MiB on
    # v5e/v6e).  Fall back to a v7x-safe 48 MiB if the query is unavailable.
    try:
        cap = int(getattr(pltpu.get_tpu_info(), "vmem_capacity_bytes", 0))
    except Exception:
        cap = 0
    if cap <= 0:
        cap = 64 * 1024 * 1024
    return (cap * 3) // 4


def _vmem_limit_bytes(tb, p, h, nxny):
    # Exact-ish steady-state footprint (no blanket 2x margin):
    weights = 2 * 2 * (p * h + 2 * h * h + h * nxny)   # bf16, x2 pipeline bufs
    vectors = 2 * 4 * (3 * h + 2 * nxny)               # f32 biases + cmask
    io = 2 * 4 * tb * (p + nxny)                       # double-buffered tiles
    acts = 6 * 4 * tb * max(p, h, nxny)                # f32 intermediates
    est = weights + vectors + io + acts + (4 << 20)    # + 4 MiB slack
    return int(min(max(est, 16 << 20), _vmem_cap_bytes()))


def decoder_pallas_forward(y, params, *, tb, out_dtype=jnp.float32):
    """Fused decoder forward; batch must be a multiple of `tb`."""
    w1, b1, w2, b2, w3, b3, w4, b4, cmask = params
    batch, p = y.shape
    h = w1.shape[1]
    nxny = w4.shape[1]
    assert batch % tb == 0

    grid = (batch // tb,)
    act_map = lambda i: (i, 0)
    const_map = lambda i: (0, 0)

    flops = 2 * batch * (p * h + 2 * h * h + h * nxny)
    bytes_accessed = (
        2 * (w1.size + w2.size + w3.size + w4.size)                  # bf16 W
        + 4 * (b1.size + b2.size + b3.size + b4.size + cmask.size)   # f32 vecs
        + 4 * y.size + jnp.dtype(out_dtype).itemsize * batch * nxny  # I/O
    )

    return pl.pallas_call(
        _decoder_kernel,
        out_shape=jax.ShapeDtypeStruct((batch, nxny), out_dtype),
        grid_spec=pltpu.PrefetchScalarGridSpec(
            num_scalar_prefetch=0,
            grid=grid,
            in_specs=[
                pl.BlockSpec((tb, p), act_map),        # y tile (pipelined)
                pl.BlockSpec(w1.shape, const_map),     # weights/biases stay
                pl.BlockSpec(b1.shape, const_map),     # resident in VMEM
                pl.BlockSpec(w2.shape, const_map),
                pl.BlockSpec(b2.shape, const_map),
                pl.BlockSpec(w3.shape, const_map),
                pl.BlockSpec(b3.shape, const_map),
                pl.BlockSpec(w4.shape, const_map),
                pl.BlockSpec(b4.shape, const_map),
                pl.BlockSpec(cmask.shape, const_map),
            ],
            out_specs=pl.BlockSpec((tb, nxny), act_map),
        ),
        compiler_params=pltpu.CompilerParams(
            dimension_semantics=("parallel",),         # both TCs on v7x
            vmem_limit_bytes=_vmem_limit_bytes(tb, p, h, nxny),
        ),
        cost_estimate=pl.CostEstimate(
            flops=int(flops), transcendentals=0,
            bytes_accessed=int(bytes_accessed)),
    )(y, w1, b1, w2, b2, w3, b3, w4, b4, cmask)


class DecoderPallas:
    """JAX/Pallas port of the PyTorch Decoder module."""

    def __init__(self, nxny, M, hidden_dim, P, control_indices, key):
        assert P == nxny, "PyTorch boolean-mask semantics require P == nxny"
        self.nxny = nxny
        self.M = M
        self.P = P
        self.hidden_dim = hidden_dim

        control_np = np.asarray(control_indices, dtype=np.int64)
        mask = np.ones(nxny, dtype=bool)
        mask[control_np] = False
        non_control_np = np.nonzero(mask)[0]
        self.control_indices = jnp.asarray(control_np, dtype=jnp.int32)
        self.non_control_indices = jnp.asarray(non_control_np, dtype=jnp.int32)

        # ---- deterministic raw parameters (torch.nn.Linear-style init) ----
        dims = [(P - M, hidden_dim), (hidden_dim, hidden_dim),
                (hidden_dim, hidden_dim), (hidden_dim, nxny - M)]
        raw = []
        for (din, dout) in dims:
            key, kw, kb = jax.random.split(key, 3)
            scale = 1.0 / np.sqrt(din)
            w = np.asarray(jax.random.uniform(kw, (din, dout), jnp.float32,
                                              -scale, scale))
            b = np.asarray(jax.random.uniform(kb, (dout,), jnp.float32,
                                              -scale, scale))
            raw.append((w, b))
        self.raw_params = raw

        # ---- fused parameters used by the Pallas kernel ----
        # Only the hidden dim is padded to 128 lanes (weights are tiny and
        # resident); the activation feature dims (P, nxny) are NOT padded, so
        # the wrapper needs no feature pad/slice HBM round trips.
        # NOTE: if hidden_dim ever lands in 129..256, padding H straight to
        # 256 is free on v6e/v7x's 256-wide MXU (but doubles passes on v5e).
        H = _round_up(hidden_dim, 128)
        self.hidden_pad = H

        (w1, b1), (w2, b2), (w3, b3), (w4, b4) = raw

        W1f = np.zeros((P, H), np.float32)        # gather baked in: zero rows
        W1f[non_control_np, :hidden_dim] = w1     # at control indices
        B1f = np.zeros((1, H), np.float32); B1f[0, :hidden_dim] = b1

        W2f = np.zeros((H, H), np.float32); W2f[:hidden_dim, :hidden_dim] = w2
        B2f = np.zeros((1, H), np.float32); B2f[0, :hidden_dim] = b2

        W3f = np.zeros((H, H), np.float32); W3f[:hidden_dim, :hidden_dim] = w3
        B3f = np.zeros((1, H), np.float32); B3f[0, :hidden_dim] = b3

        W4f = np.zeros((H, nxny), np.float32)     # scatter baked in: columns
        W4f[:hidden_dim, non_control_np] = w4     # at non-control positions
        B4f = np.zeros((1, nxny), np.float32); B4f[0, non_control_np] = b4

        Cm = np.zeros((1, nxny), np.float32); Cm[0, control_np] = 1.0

        bf16 = jnp.bfloat16
        self.params = (
            jnp.asarray(W1f, bf16), jnp.asarray(B1f, jnp.float32),
            jnp.asarray(W2f, bf16), jnp.asarray(B2f, jnp.float32),
            jnp.asarray(W3f, bf16), jnp.asarray(B3f, jnp.float32),
            jnp.asarray(W4f, bf16), jnp.asarray(B4f, jnp.float32),
            jnp.asarray(Cm, jnp.float32),
        )

    def __call__(self, y, tb=None, out_dtype=jnp.float32):
        batch = y.shape[0]
        TB = _choose_tb(batch) if tb is None else tb
        assert TB % 8 == 0 or TB == batch
        batch_pad = _round_up(batch, TB)

        y = y.astype(jnp.float32)
        if batch_pad != batch:
            # batch-only pad (< TB rows); features are never padded, so there
            # is no full-array pad/slice round trip through HBM anymore.
            y = jnp.pad(y, ((0, batch_pad - batch), (0, 0)))
        x = decoder_pallas_forward(y, self.params, tb=TB, out_dtype=out_dtype)
        if batch_pad != batch:
            x = x[:batch]
        return x


def _reference_forward(decoder, y):
    """Pure-JAX reference: PyTorch forward semantics (gather -> MLP -> scatter)
    with the same bf16-input / f32-accumulate matmul precision as the kernel."""
    (w1, b1), (w2, b2), (w3, b3), (w4, b4) = decoder.raw_params

    def lin(h, w, b):
        return jnp.dot(h.astype(jnp.bfloat16),
                       jnp.asarray(w).astype(jnp.bfloat16),
                       preferred_element_type=jnp.float32) + jnp.asarray(b)

    y = y.astype(jnp.float32)
    y_nc = y[:, decoder.non_control_indices]
    h = jnp.maximum(lin(y_nc, w1, b1), 0.0)
    h = jnp.maximum(lin(h, w2, b2), 0.0)
    h = jnp.maximum(lin(h, w3, b3), 0.0)
    out = lin(h, w4, b4)

    x = jnp.zeros((y.shape[0], decoder.nxny), dtype=jnp.float32)
    x = x.at[:, decoder.control_indices].set(y[:, decoder.control_indices])
    x = x.at[:, decoder.non_control_indices].set(out)
    return x


if __name__ == "__main__":
    # Small shapes consistent with the module: 8x8 Fisher-KPP grid (nxny=64),
    # 4 control points, hidden_dim=32, batch=2.
    batch = 2
    nxny = 64
    P = nxny
    M = 4
    hidden_dim = 32
    control_indices = [0, 5, 20, 63]

    key = jax.random.PRNGKey(0)
    key, kparam, kinput = jax.random.split(key, 3)

    decoder = DecoderPallas(nxny, M, hidden_dim, P, control_indices, kparam)
    y = jax.random.normal(kinput, (batch, P), dtype=jnp.float32)

    x = jax.block_until_ready(decoder(y))
    x_ref = jax.block_until_ready(_reference_forward(decoder, y))
    assert x.shape == (batch, nxny)
    np.testing.assert_allclose(np.asarray(x), np.asarray(x_ref),
                               rtol=1e-2, atol=1e-2)

    # Multi-tile grid with a small batch-only pad (batch=20, tb=8 -> grid=3).
    y2 = jax.random.normal(jax.random.PRNGKey(1), (20, P), dtype=jnp.float32)
    x2 = jax.block_until_ready(decoder(y2, tb=8))
    x2_ref = jax.block_until_ready(_reference_forward(decoder, y2))
    np.testing.assert_allclose(np.asarray(x2), np.asarray(x2_ref),
                               rtol=1e-2, atol=1e-2)

    # Default tile choice on a larger batch: >= 2 parallel tiles, no padding.
    y3 = jax.random.normal(jax.random.PRNGKey(2), (64, P), dtype=jnp.float32)
    x3 = jax.block_until_ready(decoder(y3))
    x3_ref = jax.block_until_ready(_reference_forward(decoder, y3))
    np.testing.assert_allclose(np.asarray(x3), np.asarray(x3_ref),
                               rtol=1e-2, atol=1e-2)

    # Optional bf16 output path (accuracy trade-off for v5e bandwidth): smoke
    # test only — shape/dtype check, no strict tolerance.
    xb = jax.block_until_ready(decoder(y3, out_dtype=jnp.bfloat16))
    assert xb.shape == (64, nxny) and xb.dtype == jnp.bfloat16

    print("KERNEL_OK")
</pallas_src>

<mosaic_0001>
module attributes {stable_mosaic.version = 11 : i64} {
  func.func @_decoder_kernel(%arg0: i32, %arg1: memref<2x64xf32, #tpu.memory_space<vmem>>, %arg2: memref<64x128xbf16, #tpu.memory_space<vmem>>, %arg3: memref<1x128xf32, #tpu.memory_space<vmem>>, %arg4: memref<128x128xbf16, #tpu.memory_space<vmem>>, %arg5: memref<1x128xf32, #tpu.memory_space<vmem>>, %arg6: memref<128x128xbf16, #tpu.memory_space<vmem>>, %arg7: memref<1x128xf32, #tpu.memory_space<vmem>>, %arg8: memref<128x64xbf16, #tpu.memory_space<vmem>>, %arg9: memref<1x64xf32, #tpu.memory_space<vmem>>, %arg10: memref<1x64xf32, #tpu.memory_space<vmem>>, %arg11: memref<2x64xf32, #tpu.memory_space<vmem>>) attributes {dimension_semantics = [#tpu.dimension_semantics<parallel>], iteration_bounds = array<i64: 1>, scalar_prefetch = 0 : i64, scratch_operands = 0 : i64, tpu.core_type = #tpu.core_type<tc>, window_params = [{transform_indices = @transform_0, window_bounds = array<i64: 2, 64>}, {pipeline_mode = #tpu.pipeline_mode<synchronous>, transform_indices = @transform_1, window_bounds = array<i64: 64, 128>}, {pipeline_mode = #tpu.pipeline_mode<synchronous>, transform_indices = @transform_2, window_bounds = array<i64: 1, 128>}, {pipeline_mode = #tpu.pipeline_mode<synchronous>, transform_indices = @transform_3, window_bounds = array<i64: 128, 128>}, {pipeline_mode = #tpu.pipeline_mode<synchronous>, transform_indices = @transform_4, window_bounds = array<i64: 1, 128>}, {pipeline_mode = #tpu.pipeline_mode<synchronous>, transform_indices = @transform_5, window_bounds = array<i64: 128, 128>}, {pipeline_mode = #tpu.pipeline_mode<synchronous>, transform_indices = @transform_6, window_bounds = array<i64: 1, 128>}, {pipeline_mode = #tpu.pipeline_mode<synchronous>, transform_indices = @transform_7, window_bounds = array<i64: 128, 64>}, {pipeline_mode = #tpu.pipeline_mode<synchronous>, transform_indices = @transform_8, window_bounds = array<i64: 1, 64>}, {pipeline_mode = #tpu.pipeline_mode<synchronous>, transform_indices = @transform_9, window_bounds = array<i64: 1, 64>}, {transform_indices = @transform_10, window_bounds = array<i64: 2, 64>}]} {
    %c0 = arith.constant 0 : index
    %c0_0 = arith.constant 0 : index
    %0 = vector.load %arg1[%c0, %c0_0] : memref<2x64xf32, #tpu.memory_space<vmem>>, vector<2x64xf32>
    %1 = arith.truncf %0 : vector<2x64xf32> to vector<2x64xbf16>
    %c0_1 = arith.constant 0 : index
    %c0_2 = arith.constant 0 : index
    %2 = vector.load %arg2[%c0_1, %c0_2] : memref<64x128xbf16, #tpu.memory_space<vmem>>, vector<64x128xbf16>
    %cst = arith.constant dense<0.000000e+00> : vector<2x128xf32>
    %3 = tpu.matmul %1, %2, %cst {dimension_numbers = #tpu.dot_dimension_numbers<[1], [0], [0], [1], [0, 0, 1, 1], [], []>} : vector<2x64xbf16>, vector<64x128xbf16>, vector<2x128xf32> -> vector<2x128xf32>
    %c0_3 = arith.constant 0 : index
    %c0_4 = arith.constant 0 : index
    %4 = vector.load %arg3[%c0_3, %c0_4] : memref<1x128xf32, #tpu.memory_space<vmem>>, vector<1x128xf32>
    %5 = vector.broadcast %4 : vector<1x128xf32> to vector<2x128xf32>
    %6 = arith.addf %3, %5 : vector<2x128xf32>
    %cst_5 = arith.constant 0.000000e+00 : f32
    %7 = vector.broadcast %cst_5 : f32 to vector<2x128xf32>
    %8 = arith.maximumf %6, %7 : vector<2x128xf32>
    %9 = arith.truncf %8 : vector<2x128xf32> to vector<2x128xbf16>
    %c0_6 = arith.constant 0 : index
    %c0_7 = arith.constant 0 : index
    %10 = vector.load %arg4[%c0_6, %c0_7] : memref<128x128xbf16, #tpu.memory_space<vmem>>, vector<128x128xbf16>
    %cst_8 = arith.constant dense<0.000000e+00> : vector<2x128xf32>
    %11 = tpu.matmul %9, %10, %cst_8 {dimension_numbers = #tpu.dot_dimension_numbers<[1], [0], [0], [1], [0, 0, 1, 1], [], []>} : vector<2x128xbf16>, vector<128x128xbf16>, vector<2x128xf32> -> vector<2x128xf32>
    %c0_9 = arith.constant 0 : index
    %c0_10 = arith.constant 0 : index
    %12 = vector.load %arg5[%c0_9, %c0_10] : memref<1x128xf32, #tpu.memory_space<vmem>>, vector<1x128xf32>
    %13 = vector.broadcast %12 : vector<1x128xf32> to vector<2x128xf32>
    %14 = arith.addf %11, %13 : vector<2x128xf32>
    %cst_11 = arith.constant 0.000000e+00 : f32
    %15 = vector.broadcast %cst_11 : f32 to vector<2x128xf32>
    %16 = arith.maximumf %14, %15 : vector<2x128xf32>
    %17 = arith.truncf %16 : vector<2x128xf32> to vector<2x128xbf16>
    %c0_12 = arith.constant 0 : index
    %c0_13 = arith.constant 0 : index
    %18 = vector.load %arg6[%c0_12, %c0_13] : memref<128x128xbf16, #tpu.memory_space<vmem>>, vector<128x128xbf16>
    %cst_14 = arith.constant dense<0.000000e+00> : vector<2x128xf32>
    %19 = tpu.matmul %17, %18, %cst_14 {dimension_numbers = #tpu.dot_dimension_numbers<[1], [0], [0], [1], [0, 0, 1, 1], [], []>} : vector<2x128xbf16>, vector<128x128xbf16>, vector<2x128xf32> -> vector<2x128xf32>
    %c0_15 = arith.constant 0 : index
    %c0_16 = arith.constant 0 : index
    %20 = vector.load %arg7[%c0_15, %c0_16] : memref<1x128xf32, #tpu.memory_space<vmem>>, vector<1x128xf32>
    %21 = vector.broadcast %20 : vector<1x128xf32> to vector<2x128xf32>
    %22 = arith.addf %19, %21 : vector<2x128xf32>
    %cst_17 = arith.constant 0.000000e+00 : f32
    %23 = vector.broadcast %cst_17 : f32 to vector<2x128xf32>
    %24 = arith.maximumf %22, %23 : vector<2x128xf32>
    %25 = arith.truncf %24 : vector<2x128xf32> to vector<2x128xbf16>
    %c0_18 = arith.constant 0 : index
    %c0_19 = arith.constant 0 : index
    %26 = vector.load %arg8[%c0_18, %c0_19] : memref<128x64xbf16, #tpu.memory_space<vmem>>, vector<128x64xbf16>
    %cst_20 = arith.constant dense<0.000000e+00> : vector<2x64xf32>
    %27 = tpu.matmul %25, %26, %cst_20 {dimension_numbers = #tpu.dot_dimension_numbers<[1], [0], [0], [1], [0, 0, 1, 1], [], []>} : vector<2x128xbf16>, vector<128x64xbf16>, vector<2x64xf32> -> vector<2x64xf32>
    %c0_21 = arith.constant 0 : index
    %c0_22 = arith.constant 0 : index
    %28 = vector.load %arg9[%c0_21, %c0_22] : memref<1x64xf32, #tpu.memory_space<vmem>>, vector<1x64xf32>
    %29 = vector.broadcast %28 : vector<1x64xf32> to vector<2x64xf32>
    %30 = arith.addf %27, %29 : vector<2x64xf32>
    %c0_23 = arith.constant 0 : index
    %c0_24 = arith.constant 0 : index
    %31 = vector.load %arg10[%c0_23, %c0_24] : memref<1x64xf32, #tpu.memory_space<vmem>>, vector<1x64xf32>
    %32 = vector.broadcast %31 : vector<1x64xf32> to vector<2x64xf32>
    %33 = arith.mulf %0, %32 : vector<2x64xf32>
    %34 = arith.addf %30, %33 : vector<2x64xf32>
    %c0_25 = arith.constant 0 : index
    %c0_26 = arith.constant 0 : index
    %35 = vector.load %arg11[%c0_25, %c0_26] : memref<2x64xf32, #tpu.memory_space<vmem>>, vector<2x64xf32>
    tpu.vector_store %arg11[%c0_25, %c0_26], %34 {strides = array<i32>} : memref<2x64xf32, #tpu.memory_space<vmem>>, vector<2x64xf32>,
    return
  }
  func.func @transform_0(%arg0: i32) -> (i32, i32) {
    %c0_i32 = arith.constant 0 : i32
    %c0_i32_0 = arith.constant 0 : i32
    return %arg0, %c0_i32 : i32, i32
  }
  func.func @transform_1(%arg0: i32) -> (i32, i32) {
    %c0_i32 = arith.constant 0 : i32
    %c0_i32_0 = arith.constant 0 : i32
    %c0_i32_1 = arith.constant 0 : i32
    return %c0_i32, %c0_i32_0 : i32, i32
  }
  func.func @transform_2(%arg0: i32) -> (i32, i32) {
    %c0_i32 = arith.constant 0 : i32
    %c0_i32_0 = arith.constant 0 : i32
    %c0_i32_1 = arith.constant 0 : i32
    return %c0_i32, %c0_i32_0 : i32, i32
  }
  func.func @transform_3(%arg0: i32) -> (i32, i32) {
    %c0_i32 = arith.constant 0 : i32
    %c0_i32_0 = arith.constant 0 : i32
    %c0_i32_1 = arith.constant 0 : i32
    return %c0_i32, %c0_i32_0 : i32, i32
  }
  func.func @transform_4(%arg0: i32) -> (i32, i32) {
    %c0_i32 = arith.constant 0 : i32
    %c0_i32_0 = arith.constant 0 : i32
    %c0_i32_1 = arith.constant 0 : i32
    return %c0_i32, %c0_i32_0 : i32, i32
  }
  func.func @transform_5(%arg0: i32) -> (i32, i32) {
    %c0_i32 = arith.constant 0 : i32
    %c0_i32_0 = arith.constant 0 : i32
    %c0_i32_1 = arith.constant 0 : i32
    return %c0_i32, %c0_i32_0 : i32, i32
  }
  func.func @transform_6(%arg0: i32) -> (i32, i32) {
    %c0_i32 = arith.constant 0 : i32
    %c0_i32_0 = arith.constant 0 : i32
    %c0_i32_1 = arith.constant 0 : i32
    return %c0_i32, %c0_i32_0 : i32, i32
  }
  func.func @transform_7(%arg0: i32) -> (i32, i32) {
    %c0_i32 = arith.constant 0 : i32
    %c0_i32_0 = arith.constant 0 : i32
    %c0_i32_1 = arith.constant 0 : i32
    return %c0_i32, %c0_i32_0 : i32, i32
  }
  func.func @transform_8(%arg0: i32) -> (i32, i32) {
    %c0_i32 = arith.constant 0 : i32
    %c0_i32_0 = arith.constant 0 : i32
    %c0_i32_1 = arith.constant 0 : i32
    return %c0_i32, %c0_i32_0 : i32, i32
  }
  func.func @transform_9(%arg0: i32) -> (i32, i32) {
    %c0_i32 = arith.constant 0 : i32
    %c0_i32_0 = arith.constant 0 : i32
    %c0_i32_1 = arith.constant 0 : i32
    return %c0_i32, %c0_i32_0 : i32, i32
  }
  func.func @transform_10(%arg0: i32) -> (i32, i32) {
    %c0_i32 = arith.constant 0 : i32
    %c0_i32_0 = arith.constant 0 : i32
    return %arg0, %c0_i32 : i32, i32
  }
}

</mosaic_0001>

<bundles_post_ra>
// kernel: tpu_custom_call.1
= control target key start
LH: loop header
LB: loop body
LE: loop exit
PB: predicated region body
PF: predicated region fallthrough
CT: control target
= control target key end

     0   :  { %15 = vsyncpa [#allocation3], 0  ;;  %s925_s0 = inlined_call_operand.vmem [shape: f32[2,64], index: 0, kind: input, shape index: {}]   ;;  %s926_s1 = inlined_call_operand.vmem [shape: bf16[64,128], index: 1, kind: input, shape index: {}]   ;;  %s927_s2 = inlined_call_operand.vmem [shape: f32[1,128], index: 2, kind: input, shape index: {}]   ;;  %s928_s3 = inlined_call_operand.vmem [shape: bf16[128,128], index: 3, kind: input, shape index: {}]   ;;  %s929_s4 = inlined_call_operand.vmem [shape: f32[1,128], index: 4, kind: input, shape index: {}]   ;;  %s930_s5 = inlined_call_operand.hbm [shape: bf16[128,128], index: 5, kind: input, shape index: {}]   ;;  %s931_s6 = inlined_call_operand.vmem [shape: f32[1,128], index: 6, kind: input, shape index: {}]   ;;  %s932_s7 = inlined_call_operand.vmem [shape: bf16[128,64], index: 7, kind: input, shape index: {}]   ;;  %s933_s8 = inlined_call_operand.vmem [shape: f32[1,64], index: 8, kind: input, shape index: {}]   ;;  %s934_s9 = inlined_call_operand.vmem [shape: f32[1,64], index: 9, kind: input, shape index: {}]   ;;  %s935_s10 = inlined_call_operand.hbm [shape: f32[2,64], index: 10, kind: output, shape index: {}]  }
   0x1   :  { %16 = vsyncpa [#allocation4], 0  ;;  %s721_s13 = smov [#allocation2]   ;;  %s673_s17 = scalar_lea.hbm %s930_s5, 1024 }
   0x2   :  { %s32_s14 = sshll.u32 %s721_s13, 4  ;;  %p674_p0 = scmp.ne.s32.totalorder %s930_s5, %s673_s17  ;;  %s33_s14 = int_to_ptr.vmem [resolvable:$true] %s32_s14 }
   0x3   :  { %p677_p1 = scmp.lt.u32.totalorder %s673_s17, %s930_s5 }
   0x5   :  { %p679_p2 = pnand %p677_p1, %p674_p0 }
   0x7   :  { %682 = shalt.err (!%p679_p2)
}
   0x8   :  { %s683_s22 = scalar_lea.vmem %s33_s14, 1024  ;;  %p688_p4 = scmp.lt.s32.totalorder %s33_s14, %s33_s14 }
   0x9   :  { %p684_p3 = scmp.ne.s32.totalorder %s33_s14, %s683_s22  ;;  %p689_p5 = scmp.lt.s32.totalorder %s683_s22, %s683_s22 }
   0xb   :  { %p690_p6 = por %p689_p5, %p688_p4 }
   0xd   :  { %p691_p7 = pnand %p690_p6, %p684_p3 }
   0xf   :  { %694 = shalt.err (!%p691_p7)
}
  0x10   :  { %s722_s23 = smov 64   ;;  %s723_s24 = smov 4  }
  0x11   :  { %38 = dma.hbm_to_vmem [thread:$0]  %s930_s5, 1024, %s33_s14, [#allocation3], %s722_s23, %s722_s23, %s723_s24  }
  0x12   :  { %717 = dma.done.wait [#allocation3], 1024  }
  0x13   :  { %718 = vsyncadd [#allocation3], 4294966272  ;;  %v724_v0 = vmov 0.0   ;;  %vm725_vm0 = vmmov 0   ;;  %v645_v1 = vld [vmem:[%s926_s1] sm:$0xff]   ;;  %v646_v2 = vld [vmem:[%s926_s1 + $0x8] sm:$0xff]  }
  0x14   :  { %567 = vmatprep.subr.bf16.mxu0 %v724_v0  ;;  %575 = vmatprep.mubr.msk.bf16.mxu0 %vm725_vm0, %v724_v0  ;;  %v649_v3 = vld [vmem:[%s928_s3] sm:$0xff]   ;;  %v647_v4 = vld [vmem:[%s926_s1 + $0x10] sm:$0xff]   ;;  %v650_v5 = vld [vmem:[%s928_s3 + $0x8] sm:$0xff]   ;;  %vm92_vm1 = vcmask 523264   ;;  %vm484_vm2 = vcmask 517120  }
  0x15   :  { %579 = vmatprep.subr.bf16.mxu1 %v724_v0  ;;  %595 = vmatprep.mubr.msk.bf16.mxu1 %vm725_vm0, %v724_v0  ;;  %v648_v6 = vld [vmem:[%s926_s1 + $0x18] sm:$0xff]   ;;  %v824_v7 = vld [vmem:[%s925_s0] sm:$0x3]  ;;  %v651_v8 = vld [vmem:[%s928_s3 + $0x10] sm:$0xff]  }
  0x16   :  { %568 = vmatpush3.bf16.msra.mxu0 %v645_v1  ;;  %580 = vmatpush3.bf16.msra.mxu1 %v649_v3  ;;  %v52_v9 = vpack.c.bf16 %v824_v7, %v824_v7  ;;  %v652_v10 = vld [vmem:[%s928_s3 + $0x18] sm:$0xff]   ;;  %v653_v11 = vld [vmem:[%s928_s3 + $0x20] sm:$0xff]   ;;  %v654_v12 = vld [vmem:[%s928_s3 + $0x28] sm:$0xff]  }
  0x17   :  { %569 = vmatprep.subr.bf16.mxu0 %v724_v0  ;;  %581 = vmatprep.subr.bf16.mxu1 %v724_v0  ;;  %v655_v13 = vld [vmem:[%s928_s3 + $0x30] sm:$0xff]   ;;  %v656_v14 = vld [vmem:[%s928_s3 + $0x38] sm:$0xff]   ;;  %v657_v15 = vld [vmem:[#allocation2] sm:$0xff]  }
  0x18   :  { %v658_v16 = vld [vmem:[#allocation2 + $0x8] sm:$0xff]   ;;  %v659_v17 = vld [vmem:[#allocation2 + $0x10] sm:$0xff]   ;;  %v660_v18 = vld [vmem:[#allocation2 + $0x18] sm:$0xff]  }
  0x19   :  { %v661_v19 = vld [vmem:[#allocation2 + $0x20] sm:$0xff]   ;;  %v662_v20 = vld [vmem:[#allocation2 + $0x28] sm:$0xff]   ;;  %v663_v29 = vld [vmem:[#allocation2 + $0x30] sm:$0xff]  }
  0x1a   :  { %570 = vmatpush3.bf16.msra.mxu0 %v646_v2  ;;  %582 = vmatpush3.bf16.msra.mxu1 %v650_v5  ;;  %v501_v21 = vld [vmem:[%s927_s2] ss:$0 sm:$0xff]  ;;  %v664_v30 = vld [vmem:[#allocation2 + $0x38] sm:$0xff]   ;;  %v666_v32 = vld [vmem:[%s932_s7 + $0x8] sm:$0xff]  }
  0x1b   :  { %571 = vmatprep.subr.bf16.mxu0 %v724_v0  ;;  %583 = vmatprep.subr.bf16.mxu1 %v724_v0  ;;  %v665_v31 = vld [vmem:[%s932_s7] sm:$0xff]   ;;  %v667_v33 = vld [vmem:[%s932_s7 + $0x10] sm:$0xff]   ;;  %v668_v34 = vld [vmem:[%s932_s7 + $0x18] sm:$0xff]  }
  0x1c   :  { %v669_v35 = vld [vmem:[%s932_s7 + $0x20] sm:$0xff]   ;;  %v670_v36 = vld [vmem:[%s932_s7 + $0x28] sm:$0xff]   ;;  %v671_v45 = vld [vmem:[%s932_s7 + $0x30] sm:$0xff]  }
  0x1d   :  { %v507_v37 = vld [vmem:[%s929_s4] ss:$0 sm:$0xff]  ;;  %v672_v46 = vld [vmem:[%s932_s7 + $0x38] sm:$0xff]  }
  0x1e   :  { %572 = vmatpush3.bf16.msra.mxu0 %v647_v4  ;;  %584 = vmatpush3.bf16.msra.mxu1 %v651_v8  ;;  %v516_v47 = vld [vmem:[%s931_s6] ss:$0 sm:$0xff]  ;;  %s726_s6 = smov [#allocation5]  }
  0x1f   :  { %573 = vmatprep.subr.bf16.mxu0 %v724_v0  ;;  %585 = vmatprep.subr.bf16.mxu1 %v724_v0  ;;  %v534_v55 = vld [vmem:[%s934_s9] ss:$0 sm:$0xff]  ;;  %s492_s7 = sshll.u32 %s726_s6, 4  ;;  %s493_s7 = int_to_ptr.vmem [resolvable:$true] %s492_s7 }
  0x20   :  { %v525_v56 = vld [vmem:[%s933_s8] ss:$0 sm:$0xff]  ;;  %v482_v57 = vmul.f32 %v534_v55, %v824_v7  ;;  %s695_s3 = scalar_lea.vmem %s493_s7, 32  ;;  %p700_p9 = scmp.lt.s32.totalorder %s493_s7, %s493_s7 }
  0x21   :  { %p696_p8 = scmp.ne.s32.totalorder %s493_s7, %s695_s3  ;;  %p701_p10 = scmp.lt.s32.totalorder %s695_s3, %s695_s3 }
  0x22   :  { %574 = vmatpush3.bf16.msra.mxu0 %v648_v6  ;;  %586 = vmatpush3.bf16.msra.mxu1 %v652_v10 }
  0x23   :  { %599 = vmatprep.subr.bf16.mxu0 %v724_v0  ;;  %587 = vmatprep.subr.bf16.mxu1 %v724_v0  ;;  %p702_p11 = por %p701_p10, %p700_p9 }
  0x25   :  { %576 = vmatmul.mubr.msk.bf16.vlgmr.msra.gmra.mrb[0].mxu0 %vm92_vm1, %v52_v9  ;;  %p703_p12 = pnand %p702_p11, %p696_p8 }
  0x26   :  { %615 = vmatprep.mubr.msk.bf16.mxu0 %vm725_vm0, %v724_v0  ;;  %588 = vmatpush3.bf16.msra.mxu1 %v653_v11 }
  0x27   :  { %589 = vmatprep.subr.bf16.mxu1 %v724_v0  ;;  %600 = vmatpush3.bf16.msra.mxu0 %v657_v15 }
  0x28   :  { %601 = vmatprep.subr.bf16.mxu0 %v724_v0 }
  0x2a   :  { %590 = vmatpush3.bf16.msra.mxu1 %v654_v12 }
  0x2b   :  { %591 = vmatprep.subr.bf16.mxu1 %v724_v0  ;;  %602 = vmatpush3.bf16.msra.mxu0 %v658_v16 }
  0x2c   :  { %603 = vmatprep.subr.bf16.mxu0 %v724_v0 }
  0x2e   :  { %592 = vmatpush3.bf16.msra.mxu1 %v655_v13 }
  0x2f   :  { %593 = vmatprep.subr.bf16.mxu1 %v724_v0  ;;  %604 = vmatpush3.bf16.msra.mxu0 %v659_v17 }
  0x30   :  { %605 = vmatprep.subr.bf16.mxu0 %v724_v0 }
  0x32   :  { %594 = vmatpush3.bf16.msra.mxu1 %v656_v14 }
  0x33   :  { %619 = vmatprep.subr.bf16.mxu1 %v724_v0  ;;  %606 = vmatpush3.bf16.msra.mxu0 %v660_v18 }
  0x34   :  { %607 = vmatprep.subr.bf16.mxu0 %v724_v0 }
  0x37   :  { %608 = vmatpush3.bf16.msra.mxu0 %v661_v19 }
  0x38   :  { %609 = vmatprep.subr.bf16.mxu0 %v724_v0 }
  0x3b   :  { %610 = vmatpush3.bf16.msra.mxu0 %v662_v20 }
  0x3c   :  { %611 = vmatprep.subr.bf16.mxu0 %v724_v0 }
  0x3f   :  { %612 = vmatpush3.bf16.msra.mxu0 %v663_v29 }
  0x40   :  { %613 = vmatprep.subr.bf16.mxu0 %v724_v0 }
  0x43   :  { %614 = vmatpush3.bf16.msra.mxu0 %v664_v30 }
  0xf8   :  { %v130_v22 = vpop.f32.mrb[0].mxu0 }
  0xf9   :  { %v131_v23 = vadd.f32 %v501_v21, %v130_v22  ;;  %v577_v24 = vpop.f32.mrb[1].mxu0 }
  0xfa   :  { %v133_v25 = vpop.f32.mrb[2].mxu0 }
  0xfb   :  { %v136_v26 = vmax.f32 %v131_v23, 0.0  ;;  %v578_v27 = vpop.f32.mrb[3].mxu0 }
  0xfd   :  { %v137_v28 = vpack.c.bf16 %v136_v26, %v136_v26 }
  0xff   :  { %596 = vmatmul.mubr.bf16.vlgmr.msra.gmra.mrb[0].mxu1 %v137_v28 }
 0x100   :  { %635 = vmatprep.mubr.msk.bf16.mxu1 %vm725_vm0, %v724_v0  ;;  %620 = vmatpush3.bf16.msra.mxu1 %v665_v31 }
 0x101   :  { %621 = vmatprep.subr.bf16.mxu1 %v724_v0 }
 0x104   :  { %622 = vmatpush3.bf16.msra.mxu1 %v666_v32 }
 0x105   :  { %623 = vmatprep.subr.bf16.mxu1 %v724_v0 }
 0x108   :  { %624 = vmatpush3.bf16.msra.mxu1 %v667_v33 }
 0x109   :  { %625 = vmatprep.subr.bf16.mxu1 %v724_v0 }
 0x10c   :  { %626 = vmatpush3.bf16.msra.mxu1 %v668_v34 }
 0x10d   :  { %627 = vmatprep.subr.bf16.mxu1 %v724_v0 }
 0x110   :  { %628 = vmatpush3.bf16.msra.mxu1 %v669_v35 }
 0x111   :  { %629 = vmatprep.subr.bf16.mxu1 %v724_v0 }
 0x114   :  { %630 = vmatpush3.bf16.msra.mxu1 %v670_v36 }
 0x115   :  { %631 = vmatprep.subr.bf16.mxu1 %v724_v0 }
 0x118   :  { %632 = vmatpush3.bf16.msra.mxu1 %v671_v45 }
 0x119   :  { %633 = vmatprep.subr.bf16.mxu1 %v724_v0 }
 0x11c   :  { %634 = vmatpush3.bf16.msra.mxu1 %v672_v46 }
 0x1d2   :  { %v243_v38 = vpop.f32.mrb[0].mxu1 }
 0x1d3   :  { %v244_v39 = vadd.f32 %v507_v37, %v243_v38  ;;  %v597_v40 = vpop.f32.mrb[1].mxu1 }
 0x1d4   :  { %v246_v41 = vpop.f32.mrb[2].mxu1 }
 0x1d5   :  { %v249_v42 = vmax.f32 %v244_v39, 0.0  ;;  %v598_v43 = vpop.f32.mrb[3].mxu1 }
 0x1d7   :  { %v250_v44 = vpack.c.bf16 %v249_v42, %v249_v42 }
 0x1d9   :  { %616 = vmatmul.mubr.bf16.vlgmr.msra.gmra.mrb[4].mxu0 %v250_v44 }
 0x2ac   :  { %v356_v48 = vpop.f32.mrb[4].mxu0 }
 0x2ad   :  { %v357_v49 = vadd.f32 %v516_v47, %v356_v48  ;;  %v617_v50 = vpop.f32.mrb[5].mxu0 }
 0x2ae   :  { %v359_v51 = vpop.f32.mrb[6].mxu0 }
 0x2af   :  { %v362_v52 = vmax.f32 %v357_v49, 0.0  ;;  %v618_v53 = vpop.f32.mrb[7].mxu0 }
 0x2b1   :  { %v363_v54 = vpack.c.bf16 %v362_v52, %v362_v52 }
 0x2b3   :  { %636 = vmatmul.mubr.bf16.vlgmr.msra.gmra.mrb[4].mxu1 %v363_v54 }
 0x386   :  { %v469_v58 = vpop.f32.mrb[4].mxu1 }
 0x387   :  { %v470_v59 = vadd.f32 %v525_v56, %v469_v58  ;;  %v637_v60 = vpop.f32.mrb[5].mxu1 }
 0x388   :  { %v472_v61 = vpop.f32.mrb[6].mxu1 }
 0x389   :  { %v483_v62 = vadd.f32 %v482_v57, %v470_v59  ;;  %v638_v63 = vpop.f32.mrb[7].mxu1 }
 0x38b   :  { %485 = vst.msk [vmem:[#allocation5] sm:$0x3] %vm484_vm2, %v483_v62 }
 0x38c   :  { %706 = shalt.err (!%p703_p12)
}
 0x38d   :  { %s707_s29 = scalar_lea.hbm %s935_s10, 32 }
 0x38e   :  { %p708_p13 = scmp.ne.s32.totalorder %s935_s10, %s707_s29  ;;  %p711_p0 = scmp.lt.u32.totalorder %s707_s29, %s935_s10 }
 0x390   :  { %p713_p1 = pnand %p711_p0, %p708_p13 }
 0x392   :  { %716 = shalt.err (!%p713_p1)
}
 0x393   :  { %495 = dma.vmem_to_hbm [thread:$0]  %s493_s7, 32, %s935_s10, [#allocation4]  }
 0x394   :  { %719 = dma.done.wait [#allocation4], 32  }
 0x395   :  { %720 = vsyncadd [#allocation4], 4294967264 }
 0x396   :  { %499 = vsyncpa [#allocation3], 1 }
 0x397   :  { %500 = vsyncpa [#allocation4], 1 }

</bundles_post_ra>
